<compile_context>
chip_gen: v5e
topology: v5e:2x2
jax: 0.10.0
libtpu: 0.0.40
codegen_flags: <defaults>
</compile_context>

<pallas_src>
import functools

import jax
import jax.numpy as jnp
import numpy as np
from jax import lax
from jax.experimental import pallas as pl
from jax.experimental.pallas import tpu as pltpu

_CLAMP_LO = 0.0001
_CLAMP_HI = 1.0 - 0.0001


# --------------------------------------------------------------------------
# Shared per-tile compute: softmax + clamp, EMA target rows, CE + ELR partials
# --------------------------------------------------------------------------
def _tile_compute(beta, rows_in_tile, lab_ref, out_ref, old_rows, loss_ref):
    """Returns the EMA-updated target rows (tb, C) f32 and writes the per-tile
    partial [sum(ce_row), sum(elr_row)] into loss_ref (SMEM, shape (1, 2)).

    Padded rows of the last tile are masked with SELECT semantics (do not
    replace the where-masks with multiplies: block padding may be inf/NaN).
    """
    tb, C = out_ref.shape
    logits = out_ref[...].astype(jnp.float32)                      # (tb, C)

    # stable softmax + clamp (exact reciprocal: approx=True ~1e-4 rel. error
    # would exceed the 1e-5 tolerance on the EMA buffer update)
    m = jnp.max(logits, axis=1, keepdims=True)
    ex = jnp.exp(logits - m)
    denom = jnp.sum(ex, axis=1, keepdims=True)
    y_pred = jnp.clip(ex * pl.reciprocal(denom, approx=False),
                      _CLAMP_LO, _CLAMP_HI)

    # EMA update (torch detaches y_pred here; forward value is identical)
    y_norm = y_pred * pl.reciprocal(
        jnp.sum(y_pred, axis=1, keepdims=True), approx=False)
    new_rows = beta * old_rows + (1.0 - beta) * y_norm              # (tb, C)

    # per-row cross entropy without materializing a float one-hot
    classes = lax.broadcasted_iota(jnp.int32, (tb, C), 1)
    logit_at_label = jnp.sum(
        jnp.where(classes == lab_ref[...], logits, 0.0),
        axis=1, keepdims=True)                                      # (tb, 1)
    ce_row = (m + jnp.log(denom)) - logit_at_label                  # (tb, 1)

    # ELR regularizer rows
    inner = jnp.sum(new_rows * y_pred, axis=1, keepdims=True)       # (tb, 1)
    elr_row = jnp.log(1.0 - inner)                                  # (tb, 1)

    # mask padded rows of the last tile; emit per-tile partial sums
    row_ids = lax.broadcasted_iota(jnp.int32, (tb, 1), 0)
    valid = row_ids < rows_in_tile
    loss_ref[0, 0] = jnp.sum(jnp.where(valid, ce_row, 0.0))
    loss_ref[0, 1] = jnp.sum(jnp.where(valid, elr_row, 0.0))
    return new_rows


# --------------------------------------------------------------------------
# Fast path: EMA buffer resident in VMEM for the whole grid (no per-row DMA)
# --------------------------------------------------------------------------
def _elr_kernel_vmem(beta, total_rows,
                     idx_ref, lab_ref, out_ref, tgt_in_ref,       # inputs
                     tgt_out_ref, loss_ref,                       # outputs
                     trows_ref):                                  # scratch
    """idx_ref     : (B,)            i32 SMEM  (resident)
       lab_ref     : (tb, 1)         i32 VMEM
       out_ref     : (tb, C)         f*  VMEM  logits (native dtype)
       tgt_in_ref  : (num_examp, C)  f32 VMEM  resident old EMA buffer
       tgt_out_ref : (num_examp, C)  f32 VMEM  resident updated buffer
       loss_ref    : (1, 2)          f32 SMEM  per-tile partial sums
       trows_ref   : (tb, C)         f32 VMEM  gathered / updated rows
    """
    t = pl.program_id(0)
    tb, C = out_ref.shape
    row0 = t * tb
    rows_in_tile = jnp.minimum(tb, total_rows - row0)   # last tile may be short

    # The resident output block carries the whole EMA buffer across the grid;
    # initialize it once from the (aliased) input copy.
    @pl.when(t == 0)
    def _init():
        tgt_out_ref[...] = tgt_in_ref[...]

    # Fused gather: dynamic row reads from the VMEM-resident buffer (no DMA).
    @pl.loop(0, tb)
    def _gather(r):
        @pl.when(r < rows_in_tile)
        def _():
            trows_ref[pl.ds(r, 1), :] = (
                tgt_in_ref[pl.ds(idx_ref[row0 + r], 1), :])

    new_rows = _tile_compute(beta, rows_in_tile, lab_ref, out_ref,
                             trows_ref[...], loss_ref)
    trows_ref[...] = new_rows

    # Fused scatter: dynamic row writes into the resident output block; it is
    # written back to HBM once, after the last grid step.
    @pl.loop(0, tb)
    def _scatter(r):
        @pl.when(r < rows_in_tile)
        def _():
            tgt_out_ref[pl.ds(idx_ref[row0 + r], 1), :] = (
                trows_ref[pl.ds(r, 1), :])


# --------------------------------------------------------------------------
# Fallback path: EMA buffer stays in HBM, rows gathered/scattered with DMA
# --------------------------------------------------------------------------
def _elr_kernel_hbm(beta, total_rows,
                    idx_ref, lab_ref, out_ref, tgt_in_hbm,        # inputs
                    tgt_out_hbm, loss_ref,                        # outputs
                    trows_ref, sem):                              # scratch
    t = pl.program_id(0)
    tb, C = out_ref.shape
    row0 = t * tb
    rows_in_tile = jnp.minimum(tb, total_rows - row0)

    def gather_copy(r):
        return pltpu.make_async_copy(
            tgt_in_hbm.at[pl.ds(idx_ref[row0 + r], 1), :],
            trows_ref.at[pl.ds(r, 1), :],
            sem.at[0])

    def scatter_copy(r):
        return pltpu.make_async_copy(
            trows_ref.at[pl.ds(r, 1), :],
            tgt_out_hbm.at[pl.ds(idx_ref[row0 + r], 1), :],
            sem.at[0])

    # gather fan: start all row DMAs, then wait on matching descriptors
    @pl.loop(0, tb)
    def _gather_start(r):
        @pl.when(r < rows_in_tile)
        def _():
            gather_copy(r).start()

    @pl.loop(0, tb)
    def _gather_wait(r):
        @pl.when(r < rows_in_tile)
        def _():
            gather_copy(r).wait()

    new_rows = _tile_compute(beta, rows_in_tile, lab_ref, out_ref,
                             trows_ref[...], loss_ref)
    trows_ref[...] = new_rows

    # scatter fan
    @pl.loop(0, tb)
    def _scatter_start(r):
        @pl.when(r < rows_in_tile)
        def _():
            scatter_copy(r).start()

    @pl.loop(0, tb)
    def _scatter_wait(r):
        @pl.when(r < rows_in_tile)
        def _():
            scatter_copy(r).wait()


# --------------------------------------------------------------------------
# Wrapper
# --------------------------------------------------------------------------
def _tpu_vmem_budget():
    """Generation-aware (usable_budget_bytes, vmem_limit_bytes)."""
    try:
        cap = int(pltpu.get_tpu_info().vmem_capacity_bytes)
    except Exception:
        cap = 64 * 1024 * 1024        # conservative: v7x physical VMEM per TC
    vmem_limit = min(int(cap * 0.70), 96 * 1024 * 1024)
    budget = int(vmem_limit * 0.75)
    return budget, vmem_limit


def _pick_batch_tile(B, C, itemsize, tile_budget):
    """Full batch when small; otherwise the biggest multiple of 8 rows that
    keeps double-buffered logits + the f32 row scratch inside the budget."""
    if tile_budget <= 0:
        tile_budget = 2 * 1024 * 1024
    per_row = max(C, 1) * (2 * itemsize + 4) + 16
    max_rows = max(8, tile_budget // per_row)
    if B <= max_rows:
        return B
    return max(8, (max_rows // 8) * 8)


def elr_forward(output, label, index, target, *, beta=0.7, lambda_=3.0,
                block_b=None, target_in_vmem=None, assume_unique_index=True):
    """Functional ELR.forward.

    output : (B, C) logits (any float dtype; widened to f32 inside the kernel)
    label  : (B,)   int class labels
    index  : (B,)   int example indices into `target` (assumed unique / batch)
    target : (num_examp, C) f32 persistent EMA buffer (updated in place when
             donated under jit)

    Returns (loss_scalar, updated_target).
    """
    B, C = output.shape
    num_examp = target.shape[0]
    if target.dtype != jnp.float32:
        target = target.astype(jnp.float32)

    budget, vmem_limit = _tpu_vmem_budget()
    target_bytes = num_examp * C * 4
    if target_in_vmem is None:
        # in + out resident copies, conservatively assume double buffering
        target_in_vmem = 4 * target_bytes <= budget // 2

    tile_budget = budget - (4 * target_bytes if target_in_vmem else 0)
    tb = block_b if block_b is not None else _pick_batch_tile(
        B, C, jnp.dtype(output.dtype).itemsize, tile_budget)
    num_tiles = pl.cdiv(B, tb)

    index = index.astype(jnp.int32)
    label2d = label.astype(jnp.int32).reshape(B, 1)

    out_shape = (
        jax.ShapeDtypeStruct((num_examp, C), jnp.float32),   # updated target
        jax.ShapeDtypeStruct((num_tiles, 2), jnp.float32),   # partial sums
    )

    if target_in_vmem:
        kernel = functools.partial(_elr_kernel_vmem, float(beta), B)
        new_target, partials = pl.pallas_call(
            kernel,
            grid=(num_tiles,),
            in_specs=[
                pl.BlockSpec(memory_space=pltpu.MemorySpace.SMEM),   # index (B,)
                pl.BlockSpec((tb, 1), lambda t: (t, 0)),             # label
                pl.BlockSpec((tb, C), lambda t: (t, 0)),             # logits
                pl.BlockSpec((num_examp, C), lambda t: (0, 0)),      # target (resident)
            ],
            out_specs=(
                pl.BlockSpec((num_examp, C), lambda t: (0, 0)),      # updated target
                pl.BlockSpec((1, 2), lambda t: (t, 0),
                             memory_space=pltpu.MemorySpace.SMEM),   # partials
            ),
            out_shape=out_shape,
            scratch_shapes=[pltpu.VMEM((tb, C), jnp.float32)],
            input_output_aliases={3: 0},
            compiler_params=pltpu.CompilerParams(
                dimension_semantics=("arbitrary",),   # resident output block
                vmem_limit_bytes=vmem_limit),
        )(index, label2d, output, target)
    else:
        kernel = functools.partial(_elr_kernel_hbm, float(beta), B)
        dims = ("parallel",) if assume_unique_index else ("arbitrary",)
        new_target, partials = pl.pallas_call(
            kernel,
            grid=(num_tiles,),
            in_specs=[
                pl.BlockSpec(memory_space=pltpu.MemorySpace.SMEM),   # index (B,)
                pl.BlockSpec((tb, 1), lambda t: (t, 0)),             # label
                pl.BlockSpec((tb, C), lambda t: (t, 0)),             # logits
                pl.BlockSpec(memory_space=pl.ANY),                   # target (HBM)
            ],
            out_specs=(
                pl.BlockSpec(memory_space=pl.ANY),                   # updated target
                pl.BlockSpec((1, 2), lambda t: (t, 0),
                             memory_space=pltpu.MemorySpace.SMEM),   # partials
            ),
            out_shape=out_shape,
            scratch_shapes=[pltpu.VMEM((tb, C), jnp.float32),
                            pltpu.SemaphoreType.DMA((1,))],
            input_output_aliases={3: 0},
            compiler_params=pltpu.CompilerParams(
                dimension_semantics=dims,
                vmem_limit_bytes=vmem_limit),
        )(index, label2d, output, target)

    ce = jnp.sum(partials[:, 0]) / B
    elr = jnp.sum(partials[:, 1]) / B
    return ce + lambda_ * elr, new_target


# --------------------------------------------------------------------------
# Pure-JAX reference mirroring the PyTorch module
# --------------------------------------------------------------------------
def elr_reference(output, label, index, target, beta=0.7, lambda_=3.0):
    logits = output.astype(jnp.float32)
    y_pred = jax.nn.softmax(logits, axis=1)
    y_pred = jnp.clip(y_pred, _CLAMP_LO, _CLAMP_HI)
    y_norm = y_pred / y_pred.sum(axis=1, keepdims=True)
    new_rows = beta * target[index] + (1.0 - beta) * y_norm
    target = target.at[index].set(new_rows)
    log_sm = jax.nn.log_softmax(logits, axis=1)
    ce = -jnp.take_along_axis(log_sm, label[:, None], axis=1).mean()
    elr = jnp.log(1.0 - (new_rows * y_pred).sum(axis=1)).mean()
    return ce + lambda_ * elr, target


if __name__ == "__main__":
    num_examp, num_classes, batch = 32, 4, 8
    beta, lambda_ = 0.7, 3.0

    key = jax.random.PRNGKey(0)
    k1, k2, k3 = jax.random.split(key, 3)
    output = jax.random.normal(k1, (batch, num_classes), dtype=jnp.float32)
    label = jax.random.randint(k2, (batch,), 0, num_classes, dtype=jnp.int32)
    # Unique example indices (per-sample EMA-buffer semantics).
    index = jax.random.permutation(k3, num_examp)[:batch].astype(jnp.int32)
    # Persistent EMA buffer, zero-initialized as in the module __init__.
    target0 = jnp.zeros((num_examp, num_classes), dtype=jnp.float32)

    # Reference first (target0 is donated to the first kernel call below).
    ref_loss, ref_target = elr_reference(output, label, index, target0,
                                         beta=beta, lambda_=lambda_)
    jax.block_until_ready((ref_loss, ref_target))

    # --- fast path: EMA buffer resident in VMEM ---------------------------
    fwd_vmem = jax.jit(
        functools.partial(elr_forward, beta=beta, lambda_=lambda_,
                          target_in_vmem=True),
        donate_argnums=(3,))
    loss_v, tgt_v = fwd_vmem(output, label, index, target0)
    jax.block_until_ready((loss_v, tgt_v))
    np.testing.assert_allclose(np.asarray(loss_v), np.asarray(ref_loss),
                               rtol=1e-5, atol=1e-5)
    np.testing.assert_allclose(np.asarray(tgt_v), np.asarray(ref_target),
                               rtol=1e-5, atol=1e-6)

    # --- fallback path: EMA buffer in HBM, per-row DMA gather/scatter -----
    target1 = jnp.zeros((num_examp, num_classes), dtype=jnp.float32)
    fwd_hbm = jax.jit(
        functools.partial(elr_forward, beta=beta, lambda_=lambda_,
                          target_in_vmem=False),
        donate_argnums=(3,))
    loss_h, tgt_h = fwd_hbm(output, label, index, target1)
    jax.block_until_ready((loss_h, tgt_h))
    np.testing.assert_allclose(np.asarray(loss_h), np.asarray(ref_loss),
                               rtol=1e-5, atol=1e-5)
    np.testing.assert_allclose(np.asarray(tgt_h), np.asarray(ref_target),
                               rtol=1e-5, atol=1e-6)

    print("KERNEL_OK")
</pallas_src>

<mosaic_0001>
module attributes {stable_mosaic.version = 11 : i64} {
  func.func @_elr_kernel_vmem(%arg0: i32, %arg1: memref<8xi32, #tpu.memory_space<smem>>, %arg2: memref<8x1xi32, #tpu.memory_space<vmem>>, %arg3: memref<8x4xf32, #tpu.memory_space<vmem>>, %arg4: memref<32x4xf32, #tpu.memory_space<vmem>>, %arg5: memref<32x4xf32, #tpu.memory_space<vmem>>, %arg6: memref<1x2xf32, #tpu.memory_space<smem>>, %arg7: memref<8x4xf32, #tpu.memory_space<vmem>>) attributes {dimension_semantics = [#tpu.dimension_semantics<arbitrary>], iteration_bounds = array<i64: 1>, scalar_prefetch = 0 : i64, scratch_operands = 1 : i64, tpu.core_type = #tpu.core_type<tc>, window_params = [{transform_indices = @transform_0, window_bounds = array<i64: 8>}, {transform_indices = @transform_1, window_bounds = array<i64: 8, 1>}, {transform_indices = @transform_2, window_bounds = array<i64: 8, 4>}, {pipeline_mode = #tpu.pipeline_mode<synchronous>, transform_indices = @transform_3, window_bounds = array<i64: 32, 4>}, {pipeline_mode = #tpu.pipeline_mode<synchronous>, transform_indices = @transform_4, window_bounds = array<i64: 32, 4>}, {transform_indices = @transform_5, window_bounds = array<i64: 1, 2>}]} {
    %c8_i32 = arith.constant 8 : i32
    %0 = arith.muli %arg0, %c8_i32 : i32
    %c8_i32_0 = arith.constant 8 : i32
    %1 = arith.subi %c8_i32_0, %0 : i32
    %c8_i32_1 = arith.constant 8 : i32
    %2 = arith.minsi %c8_i32_1, %1 : i32
    %c0_i32 = arith.constant 0 : i32
    %3 = arith.cmpi eq, %arg0, %c0_i32 : i32
    %4 = arith.extui %3 : i1 to i32
    %c0_i32_2 = arith.constant 0 : i32
    %5 = arith.cmpi ne, %4, %c0_i32_2 : i32
    scf.if %5 {
      %c0_34 = arith.constant 0 : index
      %c0_35 = arith.constant 0 : index
      %69 = vector.load %arg4[%c0_34, %c0_35] : memref<32x4xf32, #tpu.memory_space<vmem>>, vector<32x4xf32>
      %c0_36 = arith.constant 0 : index
      %c0_37 = arith.constant 0 : index
      %70 = vector.load %arg5[%c0_36, %c0_37] : memref<32x4xf32, #tpu.memory_space<vmem>>, vector<32x4xf32>
      tpu.vector_store %arg5[%c0_36, %c0_37], %69 {strides = array<i32>} : memref<32x4xf32, #tpu.memory_space<vmem>>, vector<32x4xf32>,
    } else {
    }
    %c0_i32_3 = arith.constant 0 : i32
    %c8_i32_4 = arith.constant 8 : i32
    %6 = arith.addi %c0_i32_3, %c8_i32_4 : i32
    %c1_i32 = arith.constant 1 : i32
    scf.for %arg8 = %c0_i32_3 to %6 step %c1_i32  : i32 {
      %c1_i32_34 = arith.constant 1 : i32
      %69 = arith.muli %arg8, %c1_i32_34 : i32
      %c0_i32_35 = arith.constant 0 : i32
      %70 = arith.addi %c0_i32_35, %69 : i32
      %71 = arith.cmpi slt, %70, %2 : i32
      %72 = arith.extui %71 : i1 to i32
      %c0_i32_36 = arith.constant 0 : i32
      %73 = arith.cmpi ne, %72, %c0_i32_36 : i32
      scf.if %73 {
        %74 = arith.addi %0, %70 : i32
        %75 = arith.index_cast %74 : i32 to index
        %76 = memref.load %arg1[%75] : memref<8xi32, #tpu.memory_space<smem>>
        %77 = arith.index_cast %76 : i32 to index
        %c0_37 = arith.constant 0 : index
        %78 = vector.load %arg4[%77, %c0_37] : memref<32x4xf32, #tpu.memory_space<vmem>>, vector<1x4xf32>
        %79 = arith.index_cast %70 : i32 to index
        %c0_38 = arith.constant 0 : index
        %80 = vector.load %arg7[%79, %c0_38] : memref<8x4xf32, #tpu.memory_space<vmem>>, vector<1x4xf32>
        tpu.vector_store %arg7[%79, %c0_38], %78 {strides = array<i32>} : memref<8x4xf32, #tpu.memory_space<vmem>>, vector<1x4xf32>,
      } else {
      }
    }
    %c8_i32_5 = arith.constant 8 : i32
    %c0 = arith.constant 0 : index
    %c0_6 = arith.constant 0 : index
    %7 = vector.load %arg7[%c0, %c0_6] : memref<8x4xf32, #tpu.memory_space<vmem>>, vector<8x4xf32>
    %c0_7 = arith.constant 0 : index
    %c0_8 = arith.constant 0 : index
    %8 = vector.load %arg3[%c0_7, %c0_8] : memref<8x4xf32, #tpu.memory_space<vmem>>, vector<8x4xf32>
    %cst = arith.constant dense<0xFF800000> : vector<8xf32>
    %9 = vector.multi_reduction <maximumf>, %8, %cst [1] : vector<8x4xf32> to vector<8xf32>
    %10 = vector.shape_cast %9 : vector<8xf32> to vector<8x1xf32>
    %11 = vector.broadcast %10 : vector<8x1xf32> to vector<8x4xf32>
    %12 = arith.subf %8, %11 : vector<8x4xf32>
    %13 = math.exp %12 : vector<8x4xf32>
    %cst_9 = arith.constant dense<0.000000e+00> : vector<8xf32>
    %14 = vector.multi_reduction <add>, %13, %cst_9 [1] : vector<8x4xf32> to vector<8xf32>
    %15 = vector.shape_cast %14 : vector<8xf32> to vector<8x1xf32>
    %16 = tpu.reciprocal %15 : vector<8x1xf32> -> vector<8x1xf32>
    %17 = vector.broadcast %16 : vector<8x1xf32> to vector<8x4xf32>
    %18 = arith.mulf %13, %17 : vector<8x4xf32>
    %cst_10 = arith.constant 9.99999974E-5 : f32
    %cst_11 = arith.constant 0.999899983 : f32
    %19 = vector.broadcast %cst_10 : f32 to vector<8x4xf32>
    %20 = arith.maximumf %19, %18 : vector<8x4xf32>
    %21 = vector.broadcast %cst_11 : f32 to vector<8x4xf32>
    %22 = arith.minimumf %21, %20 : vector<8x4xf32>
    %cst_12 = arith.constant dense<0.000000e+00> : vector<8xf32>
    %23 = vector.multi_reduction <add>, %22, %cst_12 [1] : vector<8x4xf32> to vector<8xf32>
    %24 = vector.shape_cast %23 : vector<8xf32> to vector<8x1xf32>
    %25 = tpu.reciprocal %24 : vector<8x1xf32> -> vector<8x1xf32>
    %26 = vector.broadcast %25 : vector<8x1xf32> to vector<8x4xf32>
    %27 = arith.mulf %22, %26 : vector<8x4xf32>
    %cst_13 = arith.constant 0.699999988 : f32
    %28 = vector.broadcast %cst_13 : f32 to vector<8x4xf32>
    %29 = arith.mulf %28, %7 : vector<8x4xf32>
    %cst_14 = arith.constant 3.000000e-01 : f32
    %30 = vector.broadcast %cst_14 : f32 to vector<8x4xf32>
    %31 = arith.mulf %30, %27 : vector<8x4xf32>
    %32 = arith.addf %29, %31 : vector<8x4xf32>
    %33 = tpu.iota {dimensions = array<i32: 1>} : vector<8x4xi32>
    %c0_15 = arith.constant 0 : index
    %c0_16 = arith.constant 0 : index
    %34 = vector.load %arg2[%c0_15, %c0_16] : memref<8x1xi32, #tpu.memory_space<vmem>>, vector<8x1xi32>
    %35 = vector.broadcast %34 : vector<8x1xi32> to vector<8x4xi32>
    %36 = arith.cmpi eq, %33, %35 : vector<8x4xi32>
    %cst_17 = arith.constant 0.000000e+00 : f32
    %37 = vector.broadcast %cst_17 : f32 to vector<8x4xf32>
    %38 = arith.select %36, %8, %37 : vector<8x4xi1>, vector<8x4xf32>
    %cst_18 = arith.constant dense<0.000000e+00> : vector<8xf32>
    %39 = vector.multi_reduction <add>, %38, %cst_18 [1] : vector<8x4xf32> to vector<8xf32>
    %40 = vector.shape_cast %39 : vector<8xf32> to vector<8x1xf32>
    %41 = math.log %15 : vector<8x1xf32>
    %42 = arith.addf %10, %41 : vector<8x1xf32>
    %43 = arith.subf %42, %40 : vector<8x1xf32>
    %44 = arith.mulf %32, %22 : vector<8x4xf32>
    %cst_19 = arith.constant dense<0.000000e+00> : vector<8xf32>
    %45 = vector.multi_reduction <add>, %44, %cst_19 [1] : vector<8x4xf32> to vector<8xf32>
    %46 = vector.shape_cast %45 : vector<8xf32> to vector<8x1xf32>
    %cst_20 = arith.constant 1.000000e+00 : f32
    %47 = vector.broadcast %cst_20 : f32 to vector<8x1xf32>
    %48 = arith.subf %47, %46 : vector<8x1xf32>
    %49 = math.log %48 : vector<8x1xf32>
    %50 = tpu.iota {dimensions = array<i32: 0>} : vector<8x1xi32>
    %51 = vector.broadcast %2 : i32 to vector<8x1xi32>
    %52 = arith.cmpi slt, %50, %51 : vector<8x1xi32>
    %cst_21 = arith.constant 0.000000e+00 : f32
    %53 = vector.broadcast %cst_21 : f32 to vector<8x1xf32>
    %54 = arith.select %52, %43, %53 : vector<8x1xi1>, vector<8x1xf32>
    %55 = vector.shape_cast %54 : vector<8x1xf32> to vector<1x8x1xf32>
    %cst_22 = arith.constant dense<0.000000e+00> : vector<1xf32>
    %56 = vector.multi_reduction <add>, %55, %cst_22 [1, 2] : vector<1x8x1xf32> to vector<1xf32>
    %57 = vector.shape_cast %56 : vector<1xf32> to vector<1x1x1xf32>
    %58 = vector.extract %57[0, 0, 0] : f32 from vector<1x1x1xf32>
    %c0_23 = arith.constant 0 : index
    %c0_24 = arith.constant 0 : index
    %59 = memref.load %arg6[%c0_23, %c0_24] : memref<1x2xf32, #tpu.memory_space<smem>>
    memref.store %58, %arg6[%c0_23, %c0_24] : memref<1x2xf32, #tpu.memory_space<smem>>
    %cst_25 = arith.constant 0.000000e+00 : f32
    %60 = vector.broadcast %cst_25 : f32 to vector<8x1xf32>
    %61 = arith.select %52, %49, %60 : vector<8x1xi1>, vector<8x1xf32>
    %62 = vector.shape_cast %61 : vector<8x1xf32> to vector<1x8x1xf32>
    %cst_26 = arith.constant dense<0.000000e+00> : vector<1xf32>
    %63 = vector.multi_reduction <add>, %62, %cst_26 [1, 2] : vector<1x8x1xf32> to vector<1xf32>
    %64 = vector.shape_cast %63 : vector<1xf32> to vector<1x1x1xf32>
    %65 = vector.extract %64[0, 0, 0] : f32 from vector<1x1x1xf32>
    %c0_27 = arith.constant 0 : index
    %c1 = arith.constant 1 : index
    %66 = memref.load %arg6[%c0_27, %c1] : memref<1x2xf32, #tpu.memory_space<smem>>
    memref.store %65, %arg6[%c0_27, %c1] : memref<1x2xf32, #tpu.memory_space<smem>>
    %c0_28 = arith.constant 0 : index
    %c0_29 = arith.constant 0 : index
    %67 = vector.load %arg7[%c0_28, %c0_29] : memref<8x4xf32, #tpu.memory_space<vmem>>, vector<8x4xf32>
    tpu.vector_store %arg7[%c0_28, %c0_29], %32 {strides = array<i32>} : memref<8x4xf32, #tpu.memory_space<vmem>>, vector<8x4xf32>,
    %c0_i32_30 = arith.constant 0 : i32
    %c8_i32_31 = arith.constant 8 : i32
    %68 = arith.addi %c0_i32_30, %c8_i32_31 : i32
    %c1_i32_32 = arith.constant 1 : i32
    scf.for %arg8 = %c0_i32_30 to %68 step %c1_i32_32  : i32 {
      %c1_i32_34 = arith.constant 1 : i32
      %69 = arith.muli %arg8, %c1_i32_34 : i32
      %c0_i32_35 = arith.constant 0 : i32
      %70 = arith.addi %c0_i32_35, %69 : i32
      %71 = arith.cmpi slt, %70, %2 : i32
      %72 = arith.extui %71 : i1 to i32
      %c0_i32_36 = arith.constant 0 : i32
      %73 = arith.cmpi ne, %72, %c0_i32_36 : i32
      scf.if %73 {
        %74 = arith.index_cast %70 : i32 to index
        %c0_37 = arith.constant 0 : index
        %75 = vector.load %arg7[%74, %c0_37] : memref<8x4xf32, #tpu.memory_space<vmem>>, vector<1x4xf32>
        %76 = arith.addi %0, %70 : i32
        %77 = arith.index_cast %76 : i32 to index
        %78 = memref.load %arg1[%77] : memref<8xi32, #tpu.memory_space<smem>>
        %79 = arith.index_cast %78 : i32 to index
        %c0_38 = arith.constant 0 : index
        %80 = vector.load %arg5[%79, %c0_38] : memref<32x4xf32, #tpu.memory_space<vmem>>, vector<1x4xf32>
        tpu.vector_store %arg5[%79, %c0_38], %75 {strides = array<i32>} : memref<32x4xf32, #tpu.memory_space<vmem>>, vector<1x4xf32>,
      } else {
      }
    }
    %c8_i32_33 = arith.constant 8 : i32
    return
  }
  func.func @transform_0(%arg0: i32) -> i32 {
    %c0_i32 = arith.constant 0 : i32
    %c0_i32_0 = arith.constant 0 : i32
    return %c0_i32 : i32
  }
  func.func @transform_1(%arg0: i32) -> (i32, i32) {
    %c0_i32 = arith.constant 0 : i32
    %c0_i32_0 = arith.constant 0 : i32
    return %arg0, %c0_i32 : i32, i32
  }
  func.func @transform_2(%arg0: i32) -> (i32, i32) {
    %c0_i32 = arith.constant 0 : i32
    %c0_i32_0 = arith.constant 0 : i32
    return %arg0, %c0_i32 : i32, i32
  }
  func.func @transform_3(%arg0: i32) -> (i32, i32) {
    %c0_i32 = arith.constant 0 : i32
    %c0_i32_0 = arith.constant 0 : i32
    %c0_i32_1 = arith.constant 0 : i32
    return %c0_i32, %c0_i32_0 : i32, i32
  }
  func.func @transform_4(%arg0: i32) -> (i32, i32) {
    %c0_i32 = arith.constant 0 : i32
    %c0_i32_0 = arith.constant 0 : i32
    %c0_i32_1 = arith.constant 0 : i32
    return %c0_i32, %c0_i32_0 : i32, i32
  }
  func.func @transform_5(%arg0: i32) -> (i32, i32) {
    %c0_i32 = arith.constant 0 : i32
    %c0_i32_0 = arith.constant 0 : i32
    return %arg0, %c0_i32 : i32, i32
  }
}

</mosaic_0001>

<bundles_post_ra>
// kernel: elr_forward.1
= control target key start
LH: loop header
LB: loop body
LE: loop exit
PB: predicated region body
PF: predicated region fallthrough
CT: control target
= control target key end

     0   :  { %11 = vsyncpa [#allocation4], 0  ;;  %s397_s0 = inlined_call_operand.vmem [shape: s32[8], index: 0, kind: input, shape index: {}]   ;;  %s398_s1 = inlined_call_operand.vmem [shape: s32[8,1], index: 1, kind: input, shape index: {}]   ;;  %s399_s2 = inlined_call_operand.vmem [shape: f32[8,4], index: 2, kind: input, shape index: {}]   ;;  %s400_s3 = inlined_call_operand.vmem [shape: f32[32,4], index: 3, kind: input, shape index: {}, may-alias: {3,4}]   ;;  %s401_s4 = inlined_call_operand.vmem [shape: f32[32,4], index: 4, kind: output, shape index: {0}, may-alias: {3,4}]   ;;  %s402_s5 = inlined_call_operand.vmem [shape: f32[1,2], index: 5, kind: output, shape index: {1}]  }
   0x1   :  { %12 = vsyncpa [#allocation5], 0  ;;  %s18_s20 = sshll.u32 %s397_s0, 4  ;;  %s303_s21 = smov [#allocation3]   ;;  %s19_s20 = int_to_ptr.vmem [resolvable:$true] %s18_s20 }
   0x2   :  { %21 = dma.vmem_to_smem %s19_s20, 16, %s303_s21, [#allocation4]  }
   0x3   :  { %291 = dma.done.wait [#allocation4], 16  }
   0x4   :  { %292 = vsyncadd [#allocation4], 4294967280 }
   0x5   :  { %32 = sfence }
   0x6   :  { %v41_v0 = vld [vmem:[%s400_s3] sm:$0xff]  ;;  %vm45_vm0 = vcmask 31744   ;;  %v42_v1 = vld [vmem:[%s400_s3 + $0x8] sm:$0xff]  ;;  %v43_v2 = vld [vmem:[%s400_s3 + $0x10] sm:$0xff]  ;;  %s295_s12 = smov 0  }
   0x7   :  { %46 = vst.msk [vmem:[%s401_s4] sm:$0xff] %vm45_vm0, %v41_v0 }
   0xe   :  { %v44_v3 = vld [vmem:[%s400_s3 + $0x18] sm:$0xff] }
   0xf   :  { %47 = vst.msk [vmem:[%s401_s4 + $0x8] sm:$0xff] %vm45_vm0, %v42_v1 }
  0x10   :  { %48 = vst.msk [vmem:[%s401_s4 + $0x10] sm:$0xff] %vm45_vm0, %v43_v2 }
  0x11   :  { %49 = vst.msk [vmem:[%s401_s4 + $0x18] sm:$0xff] %vm45_vm0, %v44_v3 }
  0x12 LB: > { %p222_p0 = scmp.ge.s32.totalorder %s297_s12, 8  ;;  %s297_s12 = sphi %s295_s12, %s55_s12  }
  0x13   : > { %s61_s13 = sld [smem:[#allocation3 + %s297_s12]] (!%p222_p0)  ;;  %s64_s17 = scalar_lea.vmem (!%p222_p0), [#allocation2], %s297_s12 }
  0x14   : > { %59 = sbr.rel (%p222_p0) target bundleno = 28 (0x1c), region = 36 }
  0x19   : > { %vm65_vm1 = vcmask 24576   ;;  %s62_s16 = scalar_lea.vmem %s400_s3, %s61_s13 }
  0x1a   : > { %v63_v4 = vld [vmem:[%s62_s16] sm:$0x1] }
  0x1b   : > { %66 = vst.msk [vmem:[%s64_s17] sm:$0x1] %vm65_vm1, %v63_v4 }
  0x1c PF: > { %s55_s12 = sadd.s32 1, %s297_s12  }
  0x1d   : > { %p52_p1 = scmp.ge.s32.totalorder %s55_s12, 8  }
  0x1e   :  { %v373_v5 = vld [vmem:[%s399_s2] sm:$0xff] (%p52_p1)  ;;  %v304_v12 = vmov (%p52_p1), 0   ;;  %v117_v43 = vlaneseq (%p52_p1)  ;;  %vm144_vm11 = vcmask (%p52_p1), 7168   ;;  %s299_s21 = smov (%p52_p1), 0  }
  0x1f   :  { %54 = sbr.rel (!%p52_p1) target bundleno = 18 (0x12), region = 80  ;;  %v70_v6 = vsel (%p52_p1), %vm45_vm0, %v373_v5, -inf  ;;  %247 = vset.pattern.permute.xlu1 (%p52_p1), %v304_v12  ;;  %248 = vset.pattern.permute.xlu0 (%p52_p1), %v304_v12  ;;  %v119_v28 = vld [vmem:[%s398_s1] sm:$0xff] (%p52_p1) }
  0x20   :  { %71 = vmax.xlane.f32.xlu0 (%p52_p1), %v70_v6  ;;  %v118_v46 = vand.u32 (%p52_p1), 127, %v117_v43 }
  0x22   :  { %v67_v38 = vld [vmem:[#allocation2] sm:$0xff] (%p52_p1) }
  0x23   :  { %v114_v42 = vmul.f32 (%p52_p1), 0.7, %v67_v38 }
  0x93   :  { %v377_v7 = vpop.xlane.xlu0 %71 }
  0x94   :  { %v73_v8 = vsub.f32 %v373_v5, %v377_v7 }
  0x96   :  { %v74_v9 = vmul.f32 1.442695, %v73_v8 }
  0x98   :  { %249 = vpow2.f32 %v74_v9 }
  0x9e   :  { %v250_v10 = vpop.eup %249 }
  0x9f   :  { %v76_v11 = vsel %vm45_vm0, %v250_v10, 0.0 }
  0xa0   :  { %77 = vadd.xlane.f32.xlu0 %v76_v11 }
 0x113   :  { %v78_v13 = vpop.xlane.xlu0 %77 }
 0x114   :  { %251 = vrcp.f32 %v78_v13  ;;  %v90_v17 = vand.u32 2147483648, %v78_v13  ;;  %v88_v19 = vand.u32 2147483647, %v78_v13  ;;  %vm84_vm3 = vweird.f32 %v78_v13 }
 0x116   :  { %v91_v21 = vor.u32 1.1754944e-38, %v90_v17  ;;  %vm89_vm5 = vcmp.eq.f32.partialorder %v88_v19, 8.507059e+37 }
 0x11a   :  { %v252_v14 = vpop.eup %251 }
 0x11b   :  { %v80_v15 = vmul.f32 %v252_v14, %v78_v13  ;;  %vm85_vm2 = vweird.f32 %v252_v14 }
 0x11c   :  { %vm86_vm4 = vmor %vm84_vm3, %vm85_vm2 }
 0x11d   :  { %v81_v16 = vsub.f32 1.0, %v80_v15 }
 0x11f   :  { %v82_v18 = vmul.f32 %v252_v14, %v81_v16 }
 0x121   :  { %v83_v20 = vadd.f32 %v252_v14, %v82_v18 }
 0x123   :  { %v87_v22 = vsel %vm86_vm4, %v252_v14, %v83_v20 }
 0x124   :  { %v92_v23 = vsel %vm89_vm5, %v91_v21, %v87_v22 }
 0x125   :  { %v93_v24 = vmul.f32 %v250_v10, %v92_v23 }
 0x127   :  { %v94_v25 = vmax.f32 %v93_v24, 0.0001 }
 0x129   :  { %v95_v26 = vmin.f32 %v94_v25, 0.9999 }
 0x12b   :  { %v96_v27 = vsel %vm45_vm0, %v95_v26, 0.0 }
 0x12c   :  { %97 = vadd.xlane.f32.xlu1 %v96_v27 }
 0x145   :  { %121 = vperm.xlu1 %247, %v119_v28  }
 0x19f   :  { %v98_v29 = vpop.xlane.xlu1 %97 }
 0x1a0   :  { %253 = vrcp.f32 %v98_v29  ;;  %v110_v33 = vand.u32 2147483648, %v98_v29  ;;  %v108_v35 = vand.u32 2147483647, %v98_v29  ;;  %vm104_vm7 = vweird.f32 %v98_v29 }
 0x1a1   :  { %255 = vlog2.f32 %v78_v13 }
 0x1a2   :  { %v111_v37 = vor.u32 1.1754944e-38, %v110_v33  ;;  %vm109_vm9 = vcmp.eq.f32.partialorder %v108_v35, 8.507059e+37 }
 0x1a6   :  { %v254_v30 = vpop.eup %253 }
 0x1a7   :  { %v100_v31 = vmul.f32 %v254_v30, %v98_v29  ;;  %vm105_vm6 = vweird.f32 %v254_v30  ;;  %v256_v52 = vpop.eup %255 }
 0x1a8   :  { %vm106_vm8 = vmor %vm104_vm7, %vm105_vm6  ;;  %v129_v55 = vmul.f32 0.6931472, %v256_v52 }
 0x1a9   :  { %v101_v32 = vsub.f32 1.0, %v100_v31 }
 0x1aa   :  { %v130_v56 = vadd.f32 %v129_v55, %v377_v7 }
 0x1ab   :  { %v102_v34 = vmul.f32 %v254_v30, %v101_v32 }
 0x1ad   :  { %v103_v36 = vadd.f32 %v254_v30, %v102_v34 }
 0x1af   :  { %v107_v39 = vsel %vm106_vm8, %v254_v30, %v103_v36 }
 0x1b0   :  { %v112_v40 = vsel %vm109_vm9, %v111_v37, %v107_v39 }
 0x1b1   :  { %v113_v41 = vmul.f32 %v112_v40, %v95_v26 }
 0x1b3   :  { %v115_v44 = vmul.f32 0.3, %v113_v41 }
 0x1b5   :  { %v116_v45 = vadd.f32 %v115_v44, %v114_v42 }
 0x1b7   :  { %v132_v47 = vmul.f32 %v116_v45, %v95_v26  ;;  %170 = vst.msk [vmem:[#allocation2] sm:$0xff] %vm45_vm0, %v116_v45  ;;  %v122_v48 = vpop.permute.xlu1 %121 }
 0x1b8   :  { %vm123_vm10 = vcmp.eq.s32.totalorder %v118_v46, %v122_v48 }
 0x1b9   :  { %v133_v49 = vsel %vm45_vm0, %v132_v47, 0.0  ;;  %v124_v50 = vsel %vm123_vm10, %v373_v5, 0.0 }
 0x1ba   :  { %134 = vadd.xlane.f32.xlu2 %v133_v49  ;;  %v125_v51 = vsel %vm45_vm0, %v124_v50, 0.0 }
 0x1c2   :  { %126 = vadd.xlane.f32.xlu2 %v125_v51 }
 0x22d   :  { %v135_v53 = vpop.xlane.xlu2 %134 }
 0x22e   :  { %v136_v54 = vsub.f32 1.0, %v135_v53 }
 0x230   :  { %257 = vlog2.f32 %v136_v54 }
 0x235   :  { %v127_v57 = vpop.xlane.xlu2 %126 }
 0x236   :  { %v258_v58 = vpop.eup %257  ;;  %v131_v59 = vsub.f32 %v130_v56, %v127_v57 }
 0x237   :  { %v138_v60 = vmul.f32 0.6931472, %v258_v58 }
 0x238   :  { %v145_v61 = vsel %vm144_vm11, %v131_v59, 0.0 }
 0x239   :  { %146 = vadd.xlane.f32.xlu0 %v145_v61  ;;  %v158_v62 = vsel %vm144_vm11, %v138_v60, 0.0 }
 0x23a   :  { %159 = vadd.xlane.f32.xlu2 %v158_v62 }
 0x2ac   :  { %v147_v63 = vpop.xlane.xlu0 %146 }
 0x2ad   :  { %v148_v0 = vrot.slane %v147_v63, 4  ;;  %v160_v1 = vpop.xlane.xlu2 %159 }
 0x2ae   :  { %v161_v2 = vrot.slane %v160_v1, 4 }
 0x2af   :  { %v149_v3 = vadd.f32 %v148_v0, %v147_v63 }
 0x2b0   :  { %v162_v4 = vadd.f32 %v161_v2, %v160_v1 }
 0x2b1   :  { %v150_v5 = vrot.slane %v149_v3, 2 }
 0x2b2   :  { %v163_v6 = vrot.slane %v162_v4, 2 }
 0x2b3   :  { %v151_v8 = vadd.f32 %v150_v5, %v149_v3 }
 0x2b4   :  { %v164_v9 = vadd.f32 %v163_v6, %v162_v4 }
 0x2b5   :  { %v152_v7 = vrot.slane %v151_v8, 1 }
 0x2b6   :  { %v165_v10 = vrot.slane %v164_v9, 1 }
 0x2b7   :  { %v153_v11 = vadd.f32 %v152_v7, %v151_v8 }
 0x2b8   :  { %v166_v12 = vadd.f32 %v165_v10, %v164_v9 }
 0x2b9   :  { %224 = vpush %v153_v11 }
 0x2ba   :  { %226 = vpush %v166_v12 }
 0x2ea   :  { %s225_s1 = spop %224 }
 0x2eb   :  { %156 = sst [smem:[#allocation6]] %s225_s1  ;;  %s227_s20 = spop %226 }
 0x2ec   :  { %169 = sst [smem:[#allocation6 + $0x1]] %s227_s20 }
 0x2ed LB: > { %p223_p2 = scmp.ge.s32.totalorder %s301_s21, 8  ;;  %s301_s21 = sphi %s299_s21, %s176_s21  }
 0x2ee   : > { %s184_s22 = sld [smem:[#allocation3 + %s301_s21]] (!%p223_p2)  ;;  %s181_s23 = scalar_lea.vmem (!%p223_p2), [#allocation2], %s301_s21 }
 0x2ef   : > { %180 = sbr.rel (%p223_p2) target bundleno = 758 (0x2f6), region = 47 }
 0x2f4   : > { %v182_v13 = vld [vmem:[%s181_s23] sm:$0x1]  ;;  %vm186_vm12 = vcmask 24576   ;;  %s185_s26 = scalar_lea.vmem %s401_s4, %s184_s22 }
 0x2f5   : > { %187 = vst.msk [vmem:[%s185_s26] sm:$0x1] %vm186_vm12, %v182_v13 }
 0x2f6 PF: > { %s176_s21 = sadd.s32 1, %s301_s21  }
 0x2f7   : > { %p173_p3 = scmp.ge.s32.totalorder %s176_s21, 8  }
 0x2f8   :  { %s195_s28 = sshll.u32 (%p173_p3), %s402_s5, 4  ;;  %s305_s29 = smov (%p173_p3), [#allocation6]   ;;  %s196_s28 = int_to_ptr.vmem [resolvable:$true] %s195_s28 }
 0x2f9   :  { %175 = sbr.rel (!%p173_p3) target bundleno = 749 (0x2ed), region = 91 }
 0x2fa   :  { %198 = dma.smem_to_vmem (%p173_p3), %s305_s29, 16, %s196_s28, [#allocation5]  }
 0x2fe   :  { %293 = dma.done.wait [#allocation5], 16  }
 0x2ff   :  { %294 = vsyncadd [#allocation5], 4294967280 }
 0x300   :  { %205 = sfence }
 0x301   :  { %206 = vsyncpa [#allocation4], 1 }
 0x302   :  { %207 = vsyncpa [#allocation5], 1 }

</bundles_post_ra>
